<compile_context>
chip_gen: v6e
topology: v6e:2x2x1
jax: 0.10.0
libtpu: 0.0.40
codegen_flags: <defaults>
</compile_context>

<pallas_src>
import jax
import jax.numpy as jnp
from jax.experimental import pallas as pl
from jax.experimental.pallas import tpu as pltpu

_EPS = 1e-6              # PyTorch F.pairwise_distance default eps (added to the difference)
_MAX_TILE_ROWS = 1024    # HBM-roofline knee is ~512 rows; bank the rest of VMEM as headroom


def _round_up(x, m):
    return (x + m - 1) // m * m


def _vmem_capacity_bytes():
    try:
        cap = int(pltpu.get_tpu_info().vmem_capacity_bytes)
        if cap > 0:
            return cap
    except Exception:
        pass
    return 64 << 20      # conservative fallback: v7x per-TensorCore VMEM


def _pick_tile_rows(batch, feat_dim, in_itemsize, label_itemsize, budget_bytes):
    # Sublane packing of the streamed dtype: f32 -> 8 rows, bf16 -> 16, int8/fp8 -> 32.
    pack = 8 * max(1, 4 // in_itemsize)
    # Double-buffered pipeline bytes per row:
    #   2 embeddings x 2 buffers x D*itemsize, plus 2 label buffers that really occupy
    #   128*label_itemsize per row in VMEM (lane-padded (tile, 1) blocks).
    bytes_per_row = 4 * feat_dim * in_itemsize + 2 * 128 * label_itemsize
    tile = budget_bytes // max(bytes_per_row, 1)
    tile = (int(tile) // pack) * pack
    tile = max(pack, min(tile, _MAX_TILE_ROWS))
    return min(tile, _round_up(batch, pack))   # never bigger than the (packed) batch


def _make_kernel(tile_rows, n_tiles, tail_valid, margin, native_sub):
    def kernel(o1_ref, o2_ref, lab_ref, out_ref):
        if native_sub:
            # bf16/f16 inputs: subtract on packed vregs, cast the narrower diff once.
            diff = (o1_ref[...] - o2_ref[...]).astype(jnp.float32) + _EPS
        else:
            diff = (o1_ref[...].astype(jnp.float32)
                    - o2_ref[...].astype(jnp.float32)) + _EPS
        d2 = jnp.sum(diff * diff, axis=-1, keepdims=True)          # (tile, 1) f32
        d = jnp.sqrt(d2)                                           # EUP
        hinge = jnp.maximum(margin - d, 0.0)
        lab = lab_ref[...].astype(jnp.float32)                     # (tile, 1)
        # Labels are 0/1 -> single select instead of (1-l)*d2 + l*hinge^2.
        per_row = jnp.where(lab > 0.5, hinge * hinge, d2)          # (tile, 1)

        def write(s):
            # Every element of this tile's (8,128) block holds the tile's partial sum.
            out_ref[...] = jnp.broadcast_to(s, out_ref.shape)

        if tail_valid == tile_rows:
            # Batch divides the tile: no masking anywhere.
            write(jnp.sum(per_row))
        else:
            is_tail = pl.program_id(0) == (n_tiles - 1)

            @pl.when(jnp.logical_not(is_tail))
            def _():
                write(jnp.sum(per_row))

            @pl.when(is_tail)
            def _():
                # Only the final (partial) tile pays for the iota/compare/select; its
                # out-of-range rows contain unspecified data from the partial block and
                # are discarded by the select.
                rows = jax.lax.broadcasted_iota(jnp.int32, (tile_rows, 1), 0)
                write(jnp.sum(jnp.where(rows < tail_valid, per_row, 0.0)))

    return kernel


def contrastive_loss(output1, output2, label, *, margin=2.0):
    B, D = output1.shape
    in_dt = jnp.dtype(output1.dtype)
    label2d = label.reshape(B, 1)                    # native dtype; cast in-kernel
    lab_dt = jnp.dtype(label2d.dtype)

    vmem_cap = _vmem_capacity_bytes()
    budget = min(int(vmem_cap * 0.55), 72 << 20)     # ~35 MiB on v7x, ~70 MiB on v5e/v6e
    vmem_limit = min(int(vmem_cap * 0.75), 96 << 20)

    tile = _pick_tile_rows(B, D, in_dt.itemsize, lab_dt.itemsize, budget)
    n_tiles = pl.cdiv(B, tile)
    tail_valid = B - (n_tiles - 1) * tile            # rows of valid data in the last tile

    native_sub = in_dt in (jnp.dtype(jnp.bfloat16), jnp.dtype(jnp.float16))
    kernel = _make_kernel(tile, n_tiles, tail_valid, float(margin), native_sub)

    partial = pl.pallas_call(
        kernel,
        out_shape=jax.ShapeDtypeStruct((n_tiles * 8, 128), jnp.float32),
        grid=(n_tiles,),
        in_specs=[
            pl.BlockSpec((tile, D), lambda i: (i, 0)),
            pl.BlockSpec((tile, D), lambda i: (i, 0)),
            pl.BlockSpec((tile, 1), lambda i: (i, 0)),
        ],
        out_specs=pl.BlockSpec((8, 128), lambda i: (i, 0)),
        compiler_params=pltpu.CompilerParams(
            dimension_semantics=("parallel",),
            vmem_limit_bytes=vmem_limit,
        ),
    )(output1, output2, label2d)

    # Element [8*t, 0] of the output holds tile t's partial sum.
    return jnp.sum(partial[0::8, 0]) / B


def _reference(output1, output2, label, margin=2.0):
    diff = output1.astype(jnp.float32) - output2.astype(jnp.float32) + _EPS
    d = jnp.sqrt(jnp.sum(diff * diff, axis=-1))
    lab = label.astype(jnp.float32)
    return jnp.mean((1.0 - lab) * d ** 2 + lab * jnp.maximum(margin - d, 0.0) ** 2)


if __name__ == "__main__":
    key = jax.random.PRNGKey(0)
    k1, k2, k3 = jax.random.split(key, 3)

    B, D = 8, 32   # small embedding batch consistent with a siamese-net head
    output1 = jax.random.normal(k1, (B, D), dtype=jnp.float32)
    output2 = jax.random.normal(k2, (B, D), dtype=jnp.float32)
    label = jax.random.bernoulli(k3, 0.5, (B,)).astype(jnp.float32)

    loss = jax.block_until_ready(contrastive_loss(output1, output2, label))
    ref = _reference(output1, output2, label)
    assert jnp.allclose(loss, ref, rtol=1e-5, atol=1e-5), (loss, ref)

    print("KERNEL_OK")
</pallas_src>

<mosaic_0001>
module attributes {stable_mosaic.version = 11 : i64} {
  func.func @kernel(%arg0: i32, %arg1: memref<8x32xf32, #tpu.memory_space<vmem>>, %arg2: memref<8x32xf32, #tpu.memory_space<vmem>>, %arg3: memref<8x1xf32, #tpu.memory_space<vmem>>, %arg4: memref<8x128xf32, #tpu.memory_space<vmem>>) attributes {dimension_semantics = [#tpu.dimension_semantics<parallel>], iteration_bounds = array<i64: 1>, scalar_prefetch = 0 : i64, scratch_operands = 0 : i64, tpu.core_type = #tpu.core_type<tc>, window_params = [{transform_indices = @transform_0, window_bounds = array<i64: 8, 32>}, {transform_indices = @transform_1, window_bounds = array<i64: 8, 32>}, {transform_indices = @transform_2, window_bounds = array<i64: 8, 1>}, {transform_indices = @transform_3, window_bounds = array<i64: 8, 128>}]} {
    %c0 = arith.constant 0 : index
    %c0_0 = arith.constant 0 : index
    %0 = vector.load %arg1[%c0, %c0_0] : memref<8x32xf32, #tpu.memory_space<vmem>>, vector<8x32xf32>
    %c0_1 = arith.constant 0 : index
    %c0_2 = arith.constant 0 : index
    %1 = vector.load %arg2[%c0_1, %c0_2] : memref<8x32xf32, #tpu.memory_space<vmem>>, vector<8x32xf32>
    %2 = arith.subf %0, %1 : vector<8x32xf32>
    %cst = arith.constant 9.99999997E-7 : f32
    %3 = vector.broadcast %cst : f32 to vector<8x32xf32>
    %4 = arith.addf %2, %3 : vector<8x32xf32>
    %5 = arith.mulf %4, %4 : vector<8x32xf32>
    %cst_3 = arith.constant dense<0.000000e+00> : vector<8xf32>
    %6 = vector.multi_reduction <add>, %5, %cst_3 [1] : vector<8x32xf32> to vector<8xf32>
    %7 = vector.shape_cast %6 : vector<8xf32> to vector<8x1xf32>
    %8 = math.sqrt %7 : vector<8x1xf32>
    %cst_4 = arith.constant 2.000000e+00 : f32
    %9 = vector.broadcast %cst_4 : f32 to vector<8x1xf32>
    %10 = arith.subf %9, %8 : vector<8x1xf32>
    %cst_5 = arith.constant 0.000000e+00 : f32
    %11 = vector.broadcast %cst_5 : f32 to vector<8x1xf32>
    %12 = arith.maximumf %10, %11 : vector<8x1xf32>
    %c0_6 = arith.constant 0 : index
    %c0_7 = arith.constant 0 : index
    %13 = vector.load %arg3[%c0_6, %c0_7] : memref<8x1xf32, #tpu.memory_space<vmem>>, vector<8x1xf32>
    %cst_8 = arith.constant 5.000000e-01 : f32
    %14 = vector.broadcast %cst_8 : f32 to vector<8x1xf32>
    %15 = arith.cmpf ogt, %13, %14 : vector<8x1xf32>
    %16 = arith.mulf %12, %12 : vector<8x1xf32>
    %17 = arith.select %15, %16, %7 : vector<8x1xi1>, vector<8x1xf32>
    %18 = vector.shape_cast %17 : vector<8x1xf32> to vector<1x8x1xf32>
    %cst_9 = arith.constant dense<0.000000e+00> : vector<1xf32>
    %19 = vector.multi_reduction <add>, %18, %cst_9 [1, 2] : vector<1x8x1xf32> to vector<1xf32>
    %20 = vector.shape_cast %19 : vector<1xf32> to vector<1x1x1xf32>
    %21 = vector.extract %20[0, 0, 0] : f32 from vector<1x1x1xf32>
    %22 = vector.broadcast %21 : f32 to vector<8x128xf32>
    %c0_10 = arith.constant 0 : index
    %c0_11 = arith.constant 0 : index
    %23 = vector.load %arg4[%c0_10, %c0_11] : memref<8x128xf32, #tpu.memory_space<vmem>>, vector<8x128xf32>
    tpu.vector_store %arg4[%c0_10, %c0_11], %22 {strides = array<i32>} : memref<8x128xf32, #tpu.memory_space<vmem>>, vector<8x128xf32>,
    return
  }
  func.func @transform_0(%arg0: i32) -> (i32, i32) {
    %c0_i32 = arith.constant 0 : i32
    %c0_i32_0 = arith.constant 0 : i32
    return %arg0, %c0_i32 : i32, i32
  }
  func.func @transform_1(%arg0: i32) -> (i32, i32) {
    %c0_i32 = arith.constant 0 : i32
    %c0_i32_0 = arith.constant 0 : i32
    return %arg0, %c0_i32 : i32, i32
  }
  func.func @transform_2(%arg0: i32) -> (i32, i32) {
    %c0_i32 = arith.constant 0 : i32
    %c0_i32_0 = arith.constant 0 : i32
    return %arg0, %c0_i32 : i32, i32
  }
  func.func @transform_3(%arg0: i32) -> (i32, i32) {
    %c0_i32 = arith.constant 0 : i32
    %c0_i32_0 = arith.constant 0 : i32
    return %arg0, %c0_i32 : i32, i32
  }
}

</mosaic_0001>

<bundles_post_ra>
// kernel: tpu_custom_call.1
= control target key start
LH: loop header
LB: loop body
LE: loop exit
PB: predicated region body
PF: predicated region fallthrough
CT: control target
= control target key end

     0   :  { %8 = vsyncpa [#allocation3], 0  ;;  %s161_s0 = inlined_call_operand.vmem [shape: f32[8,32], index: 0, kind: input, shape index: {}]   ;;  %s162_s1 = inlined_call_operand.hbm [shape: f32[8,32], index: 1, kind: input, shape index: {}]   ;;  %s163_s2 = inlined_call_operand.vmem [shape: f32[8,1], index: 2, kind: input, shape index: {}]   ;;  %s164_s3 = inlined_call_operand.hbm [shape: f32[8,128], index: 3, kind: output, shape index: {}]  }
   0x1   :  { %9 = vsyncpa [#allocation4], 0  ;;  %s127_s12 = smov [#allocation2]  }
   0x2   :  { %s18_s13 = sshll.u32 %s127_s12, 4  ;;  %s19_s13 = int_to_ptr.vmem [resolvable:$true] %s18_s13 }
   0x3   :  { %s91_s14 = scalar_lea.vmem %s19_s13, 128  ;;  %p96_p1 = scmp.lt.s32.totalorder %s19_s13, %s19_s13 }
   0x4   :  { %p92_p0 = scmp.ne.s32.totalorder %s19_s13, %s91_s14  ;;  %p97_p2 = scmp.lt.s32.totalorder %s91_s14, %s91_s14 }
   0x6   :  { %p98_p3 = por %p97_p2, %p96_p1 }
   0x8   :  { %p99_p4 = pnand %p98_p3, %p92_p0 }
   0xa   :  { %102 = shalt.err (!%p99_p4)
}
   0xb   :  { %21 = dma.hbm_to_vmem [thread:$0]  %s162_s1, 128, %s19_s13, [#allocation3]  }
   0xc   :  { %123 = dma.done.wait [#allocation3], 128  }
   0xd   :  { %124 = vsyncadd [#allocation3], 4294967168  ;;  %v27_v0 = vld [vmem:[%s161_s0] sm:$0xff]  ;;  %vm32_vm0 = vcmask 261120   ;;  %vm49_vm4 = vcmask 7168   ;;  %s128_s0 = smov [#allocation5]  }
   0xe   :  { %v28_v1 = vld [vmem:[#allocation2] sm:$0xff]  ;;  %s68_s20 = sshll.u32 %s128_s0, 4  ;;  %s69_s20 = int_to_ptr.vmem [resolvable:$true] %s68_s20 }
   0xf   :  { %v29_v2 = vsub.f32 %v27_v0, %v28_v1  ;;  %v45_v13 = vld [vmem:[%s163_s2] sm:$0xff]  ;;  %s103_s2 = scalar_lea.vmem %s69_s20, 128  ;;  %p108_p6 = scmp.lt.s32.totalorder %s69_s20, %s69_s20 }
  0x10   :  { %vm46_vm3 = vcmp.gt.f32.partialorder %v45_v13, 0.5  ;;  %p104_p5 = scmp.ne.s32.totalorder %s69_s20, %s103_s2  ;;  %p109_p7 = scmp.lt.s32.totalorder %s103_s2, %s103_s2 }
  0x11   :  { %v30_v3 = vadd.f32 1e-06, %v29_v2 }
  0x12   :  { %p110_p8 = por %p109_p7, %p108_p6 }
  0x13   :  { %v31_v4 = vmul.f32 %v30_v3, %v30_v3 }
  0x14   :  { %p111_p9 = pnand %p110_p8, %p104_p5 }
  0x15   :  { %v33_v5 = vsel %vm32_vm0, %v31_v4, 0.0 }
  0x16   :  { %34 = vadd.xlane.f32.xlu0 %v33_v5 }
  0x9f   :  { %v35_v6 = vpop.xlane.xlu0 %34 }
  0xa0   :  { %81 = vrsqrt.f32 %v35_v6  ;;  %vm38_vm1 = vcmp.eq.f32.partialorder %v35_v6, inf  ;;  %v41_v9 = vand.u32 2147483648, %v35_v6  ;;  %vm40_vm2 = vcmp.eq.f32.partialorder %v35_v6, 0.0 }
  0xad   :  { %v82_v7 = vpop.eup %81 }
  0xae   :  { %v37_v8 = vmul.f32 %v82_v7, %v35_v6 }
  0xb0   :  { %v39_v10 = vsel %vm38_vm1, %v35_v6, %v37_v8 }
  0xb1   :  { %v42_v11 = vsel %vm40_vm2, %v41_v9, %v39_v10 }
  0xb2   :  { %v43_v12 = vsub.f32 2.0, %v42_v11 }
  0xb4   :  { %v44_v14 = vmax.f32 %v43_v12, 0.0 }
  0xb6   :  { %v47_v15 = vmul.f32 %v44_v14, %v44_v14 }
  0xb8   :  { %v48_v16 = vsel %vm46_vm3, %v47_v15, %v35_v6 }
  0xb9   :  { %v50_v17 = vsel %vm49_vm4, %v48_v16, 0.0 }
  0xba   :  { %51 = vadd.xlane.f32.xlu0 %v50_v17 }
 0x143   :  { %v52_v18 = vpop.xlane.xlu0 %51 }
 0x144   :  { %v53_v19 = vrot.slane %v52_v18, 4 }
 0x146   :  { %v54_v20 = vadd.f32 %v53_v19, %v52_v18 }
 0x148   :  { %v55_v21 = vrot.slane %v54_v20, 2 }
 0x14a   :  { %v56_v22 = vadd.f32 %v55_v21, %v54_v20 }
 0x14c   :  { %v57_v23 = vrot.slane %v56_v22, 1 }
 0x14e   :  { %v58_v24 = vadd.f32 %v57_v23, %v56_v22 }
 0x150   :  { %77 = vpush %v58_v24 }
 0x181   :  { %s78_s21 = spop %77 }
 0x182   :  { %v60_v25 = vstv %s78_s21 }
 0x183   :  { %61 = vst [vmem:[#allocation5] sm:$0xff] %v60_v25 }
 0x184   :  { %114 = shalt.err (!%p111_p9)
}
 0x185   :  { %71 = dma.vmem_to_hbm [thread:$0]  %s69_s20, 128, %s164_s3, [#allocation4]  }
 0x186   :  { %125 = dma.done.wait [#allocation4], 128  }
 0x187   :  { %126 = vsyncadd [#allocation4], 4294967168 }
 0x188   :  { %75 = vsyncpa [#allocation3], 1 }
 0x189   :  { %76 = vsyncpa [#allocation4], 1 }

</bundles_post_ra>
